<compile_context>
chip_gen: v7x
topology: tpu7x:2x2x1
jax: 0.10.0
libtpu: 0.0.40
codegen_flags: <defaults>
</compile_context>

<pallas_src>
import jax
import jax.numpy as jnp
from jax.experimental import pallas as pl
from jax.experimental.pallas import tpu as pltpu

HIDDEN = 32


def _rnn_kernel(x_ref, h0_ref, wih_ref, whh_ref, b_ref, wout_ref, bout_ref, out_ref):
    # x_ref:    (T*Bp, I)  VMEM  (time-major, batch padded to 8, pre-flattened)
    # h0_ref:   (Bp, H)    VMEM
    # wih_ref:  (I, H)     VMEM  (pre-transposed W_ih^T)
    # whh_ref:  (H, H)     VMEM  (pre-transposed W_hh^T)
    # b_ref:    (1, H)     VMEM  (b_ih + b_hh)
    # wout_ref: (1, H)     VMEM  (W_out as a row vector)
    # bout_ref: (1, 1)     SMEM  (scalar output bias)
    # out_ref:  (T*Bp, 1)  VMEM
    TBP, _ = x_ref.shape
    BP, H = h0_ref.shape
    T = TBP // BP

    # (1) Hoisted input projection: one well-shaped matmul, off the serial chain.
    xw = jnp.dot(x_ref[...], wih_ref[...],
                 preferred_element_type=jnp.float32) + b_ref[...]       # (T*Bp, H)

    # (2) Serial recurrence, fully unrolled; h and all per-step hidden states stay in
    #     vregs, W_hh loaded once. Slices of xw are aligned to the 8-row sublane tile.
    whh = whh_ref[...]
    h = h0_ref[...]
    hs = []
    for t in range(T):
        h = jnp.tanh(xw[t * BP:(t + 1) * BP, :] +
                     jnp.dot(h, whh, preferred_element_type=jnp.float32))
        hs.append(h)
    h_all = jnp.concatenate(hs, axis=0)                                 # (T*Bp, H)

    # (3) Output projection on the VPU (+ XLU lane reduction) instead of an N=1 MXU
    #     matmul; scalar bias comes from SMEM.
    out = jnp.sum(h_all * wout_ref[...], axis=-1, keepdims=True) + bout_ref[0, 0]
    out_ref[...] = out.astype(out_ref.dtype)


def _prepare_params(params):
    """One-time weight prep (hoisted out of the per-call path)."""
    w_ih, w_hh, b_ih, b_hh, w_out, b_out = params
    H = w_hh.shape[0]
    return (jnp.transpose(w_ih).astype(jnp.float32),                 # (I, H)
            jnp.transpose(w_hh).astype(jnp.float32),                 # (H, H)
            (b_ih + b_hh).reshape(1, H).astype(jnp.float32),         # (1, H)
            w_out.reshape(1, H).astype(jnp.float32),                 # (1, H)
            b_out.reshape(1, 1).astype(jnp.float32))                 # (1, 1)


@jax.jit
def rnn_forward(x, h_state, prepared):
    """x: (B, T, I) float32, h_state: (1, B, H) or None. Returns (B, T, 1)."""
    wih_t, whh_t, b, wout_row, bout = prepared
    B, T, I = x.shape
    H = whh_t.shape[0]
    BP = ((B + 7) // 8) * 8          # pad batch up to the 8-sublane granule

    # Time-major, batch-padded, flattened: (B, T, I) -> (T*Bp, I). Fused under jit.
    x_tm = jnp.transpose(x, (1, 0, 2)).astype(jnp.float32)
    x_tm = jnp.pad(x_tm, ((0, 0), (0, BP - B), (0, 0))).reshape(T * BP, I)

    if h_state is None:
        h0 = jnp.zeros((BP, H), jnp.float32)
    else:
        if h_state.shape != (1, B, H):   # num_layers=1 only
            raise ValueError(f"expected h_state of shape (1, {B}, {H}), got {h_state.shape}")
        h0 = jnp.pad(h_state.reshape(B, H).astype(jnp.float32), ((0, BP - B), (0, 0)))

    vmem = pl.BlockSpec(memory_space=pltpu.MemorySpace.VMEM)
    smem = pl.BlockSpec(memory_space=pltpu.MemorySpace.SMEM)
    out_flat = pl.pallas_call(
        _rnn_kernel,
        out_shape=jax.ShapeDtypeStruct((T * BP, 1), jnp.float32),
        in_specs=[vmem, vmem, vmem, vmem, vmem, vmem, smem],
        out_specs=vmem,
    )(x_tm, h0, wih_t, whh_t, b, wout_row, bout)

    out = out_flat.reshape(T, BP, 1)[:, :B, :]                        # (T, B, 1)
    return jnp.transpose(out, (1, 0, 2))                              # (B, T, 1)


def _reference(x, h_state, params):
    """Pure-JAX reference matching torch.nn.RNN (tanh) + per-step Linear."""
    w_ih, w_hh, b_ih, b_hh, w_out, b_out = params
    B, T, I = x.shape
    h = jnp.zeros((B, HIDDEN), jnp.float32) if h_state is None else h_state.reshape(B, HIDDEN)
    outs = []
    for t in range(T):
        h = jnp.tanh(x[:, t, :] @ w_ih.T + b_ih + h @ w_hh.T + b_hh)
        outs.append(h @ w_out.T + b_out)
    return jnp.stack(outs, axis=1)


def init_params(key, input_size):
    ks = jax.random.split(key, 6)
    H = HIDDEN
    s = 1.0 / jnp.sqrt(H)
    w_ih = jax.random.uniform(ks[0], (H, input_size), jnp.float32, -s, s)
    w_hh = jax.random.uniform(ks[1], (H, H), jnp.float32, -s, s)
    b_ih = jax.random.uniform(ks[2], (H,), jnp.float32, -s, s)
    b_hh = jax.random.uniform(ks[3], (H,), jnp.float32, -s, s)
    w_out = jax.random.uniform(ks[4], (1, H), jnp.float32, -s, s)
    b_out = jax.random.uniform(ks[5], (1,), jnp.float32, -s, s)
    return (w_ih, w_hh, b_ih, b_hh, w_out, b_out)


if __name__ == "__main__":
    key = jax.random.PRNGKey(0)
    k_x, k_p = jax.random.split(key)

    B, T, INPUT_SIZE = 2, 8, 4
    x = jax.random.normal(k_x, (B, T, INPUT_SIZE), jnp.float32)
    h_state = None  # matches the module's default usage
    params = init_params(k_p, INPUT_SIZE)
    prepared = _prepare_params(params)   # one-time weight prep

    out = rnn_forward(x, h_state, prepared)
    out = jax.block_until_ready(out)

    ref = _reference(x, h_state, params)
    assert out.shape == (B, T, 1)
    assert jnp.allclose(out, ref, atol=1e-5, rtol=1e-5)
    print("KERNEL_OK")
</pallas_src>

<mosaic_0001>
module attributes {stable_mosaic.version = 11 : i64} {
  func.func @_rnn_kernel(%arg0: memref<64x4xf32, #tpu.memory_space<vmem>>, %arg1: memref<8x32xf32, #tpu.memory_space<vmem>>, %arg2: memref<4x32xf32, #tpu.memory_space<vmem>>, %arg3: memref<32x32xf32, #tpu.memory_space<vmem>>, %arg4: memref<1x32xf32, #tpu.memory_space<vmem>>, %arg5: memref<1x32xf32, #tpu.memory_space<vmem>>, %arg6: memref<1x1xf32, #tpu.memory_space<smem>>, %arg7: memref<64x1xf32, #tpu.memory_space<vmem>>) attributes {dimension_semantics = [], scalar_prefetch = 0 : i64, scratch_operands = 0 : i64, tpu.core_type = #tpu.core_type<tc>} {
    %c0 = arith.constant 0 : index
    %c0_0 = arith.constant 0 : index
    %0 = vector.load %arg0[%c0, %c0_0] : memref<64x4xf32, #tpu.memory_space<vmem>>, vector<64x4xf32>
    %c0_1 = arith.constant 0 : index
    %c0_2 = arith.constant 0 : index
    %1 = vector.load %arg2[%c0_1, %c0_2] : memref<4x32xf32, #tpu.memory_space<vmem>>, vector<4x32xf32>
    %cst = arith.constant dense<0.000000e+00> : vector<64x32xf32>
    %2 = tpu.matmul %0, %1, %cst {dimension_numbers = #tpu.dot_dimension_numbers<[1], [0], [0], [1], [0, 0, 1, 1], [], []>} : vector<64x4xf32>, vector<4x32xf32>, vector<64x32xf32> -> vector<64x32xf32>
    %c0_3 = arith.constant 0 : index
    %c0_4 = arith.constant 0 : index
    %3 = vector.load %arg4[%c0_3, %c0_4] : memref<1x32xf32, #tpu.memory_space<vmem>>, vector<1x32xf32>
    %4 = vector.broadcast %3 : vector<1x32xf32> to vector<64x32xf32>
    %5 = arith.addf %2, %4 : vector<64x32xf32>
    %c0_5 = arith.constant 0 : index
    %c0_6 = arith.constant 0 : index
    %6 = vector.load %arg3[%c0_5, %c0_6] : memref<32x32xf32, #tpu.memory_space<vmem>>, vector<32x32xf32>
    %c0_7 = arith.constant 0 : index
    %c0_8 = arith.constant 0 : index
    %7 = vector.load %arg1[%c0_7, %c0_8] : memref<8x32xf32, #tpu.memory_space<vmem>>, vector<8x32xf32>
    %8 = vector.extract_strided_slice %5 {offsets = [0, 0], sizes = [8, 32], strides = [1, 1]} : vector<64x32xf32> to vector<8x32xf32>
    %cst_9 = arith.constant dense<0.000000e+00> : vector<8x32xf32>
    %9 = tpu.matmul %7, %6, %cst_9 {dimension_numbers = #tpu.dot_dimension_numbers<[1], [0], [0], [1], [0, 0, 1, 1], [], []>} : vector<8x32xf32>, vector<32x32xf32>, vector<8x32xf32> -> vector<8x32xf32>
    %10 = arith.addf %8, %9 : vector<8x32xf32>
    %11 = math.tanh %10 : vector<8x32xf32>
    %12 = vector.extract_strided_slice %5 {offsets = [8, 0], sizes = [8, 32], strides = [1, 1]} : vector<64x32xf32> to vector<8x32xf32>
    %cst_10 = arith.constant dense<0.000000e+00> : vector<8x32xf32>
    %13 = tpu.matmul %11, %6, %cst_10 {dimension_numbers = #tpu.dot_dimension_numbers<[1], [0], [0], [1], [0, 0, 1, 1], [], []>} : vector<8x32xf32>, vector<32x32xf32>, vector<8x32xf32> -> vector<8x32xf32>
    %14 = arith.addf %12, %13 : vector<8x32xf32>
    %15 = math.tanh %14 : vector<8x32xf32>
    %16 = vector.extract_strided_slice %5 {offsets = [16, 0], sizes = [8, 32], strides = [1, 1]} : vector<64x32xf32> to vector<8x32xf32>
    %cst_11 = arith.constant dense<0.000000e+00> : vector<8x32xf32>
    %17 = tpu.matmul %15, %6, %cst_11 {dimension_numbers = #tpu.dot_dimension_numbers<[1], [0], [0], [1], [0, 0, 1, 1], [], []>} : vector<8x32xf32>, vector<32x32xf32>, vector<8x32xf32> -> vector<8x32xf32>
    %18 = arith.addf %16, %17 : vector<8x32xf32>
    %19 = math.tanh %18 : vector<8x32xf32>
    %20 = vector.extract_strided_slice %5 {offsets = [24, 0], sizes = [8, 32], strides = [1, 1]} : vector<64x32xf32> to vector<8x32xf32>
    %cst_12 = arith.constant dense<0.000000e+00> : vector<8x32xf32>
    %21 = tpu.matmul %19, %6, %cst_12 {dimension_numbers = #tpu.dot_dimension_numbers<[1], [0], [0], [1], [0, 0, 1, 1], [], []>} : vector<8x32xf32>, vector<32x32xf32>, vector<8x32xf32> -> vector<8x32xf32>
    %22 = arith.addf %20, %21 : vector<8x32xf32>
    %23 = math.tanh %22 : vector<8x32xf32>
    %24 = vector.extract_strided_slice %5 {offsets = [32, 0], sizes = [8, 32], strides = [1, 1]} : vector<64x32xf32> to vector<8x32xf32>
    %cst_13 = arith.constant dense<0.000000e+00> : vector<8x32xf32>
    %25 = tpu.matmul %23, %6, %cst_13 {dimension_numbers = #tpu.dot_dimension_numbers<[1], [0], [0], [1], [0, 0, 1, 1], [], []>} : vector<8x32xf32>, vector<32x32xf32>, vector<8x32xf32> -> vector<8x32xf32>
    %26 = arith.addf %24, %25 : vector<8x32xf32>
    %27 = math.tanh %26 : vector<8x32xf32>
    %28 = vector.extract_strided_slice %5 {offsets = [40, 0], sizes = [8, 32], strides = [1, 1]} : vector<64x32xf32> to vector<8x32xf32>
    %cst_14 = arith.constant dense<0.000000e+00> : vector<8x32xf32>
    %29 = tpu.matmul %27, %6, %cst_14 {dimension_numbers = #tpu.dot_dimension_numbers<[1], [0], [0], [1], [0, 0, 1, 1], [], []>} : vector<8x32xf32>, vector<32x32xf32>, vector<8x32xf32> -> vector<8x32xf32>
    %30 = arith.addf %28, %29 : vector<8x32xf32>
    %31 = math.tanh %30 : vector<8x32xf32>
    %32 = vector.extract_strided_slice %5 {offsets = [48, 0], sizes = [8, 32], strides = [1, 1]} : vector<64x32xf32> to vector<8x32xf32>
    %cst_15 = arith.constant dense<0.000000e+00> : vector<8x32xf32>
    %33 = tpu.matmul %31, %6, %cst_15 {dimension_numbers = #tpu.dot_dimension_numbers<[1], [0], [0], [1], [0, 0, 1, 1], [], []>} : vector<8x32xf32>, vector<32x32xf32>, vector<8x32xf32> -> vector<8x32xf32>
    %34 = arith.addf %32, %33 : vector<8x32xf32>
    %35 = math.tanh %34 : vector<8x32xf32>
    %36 = vector.extract_strided_slice %5 {offsets = [56, 0], sizes = [8, 32], strides = [1, 1]} : vector<64x32xf32> to vector<8x32xf32>
    %cst_16 = arith.constant dense<0.000000e+00> : vector<8x32xf32>
    %37 = tpu.matmul %35, %6, %cst_16 {dimension_numbers = #tpu.dot_dimension_numbers<[1], [0], [0], [1], [0, 0, 1, 1], [], []>} : vector<8x32xf32>, vector<32x32xf32>, vector<8x32xf32> -> vector<8x32xf32>
    %38 = arith.addf %36, %37 : vector<8x32xf32>
    %39 = math.tanh %38 : vector<8x32xf32>
    %40 = tpu.concatenate %11, %15, %19, %23, %27, %31, %35, %39 in 0 : vector<8x32xf32>, vector<8x32xf32>, vector<8x32xf32>, vector<8x32xf32>, vector<8x32xf32>, vector<8x32xf32>, vector<8x32xf32>, vector<8x32xf32> -> vector<64x32xf32>
    %c0_17 = arith.constant 0 : index
    %c0_18 = arith.constant 0 : index
    %41 = vector.load %arg5[%c0_17, %c0_18] : memref<1x32xf32, #tpu.memory_space<vmem>>, vector<1x32xf32>
    %42 = vector.broadcast %41 : vector<1x32xf32> to vector<64x32xf32>
    %43 = arith.mulf %40, %42 : vector<64x32xf32>
    %cst_19 = arith.constant dense<0.000000e+00> : vector<64xf32>
    %44 = vector.multi_reduction <add>, %43, %cst_19 [1] : vector<64x32xf32> to vector<64xf32>
    %45 = vector.shape_cast %44 : vector<64xf32> to vector<64x1xf32>
    %c0_20 = arith.constant 0 : index
    %c0_21 = arith.constant 0 : index
    %46 = memref.load %arg6[%c0_20, %c0_21] : memref<1x1xf32, #tpu.memory_space<smem>>
    %47 = vector.broadcast %46 : f32 to vector<64x1xf32>
    %48 = arith.addf %45, %47 : vector<64x1xf32>
    %c0_22 = arith.constant 0 : index
    %c0_23 = arith.constant 0 : index
    %49 = vector.load %arg7[%c0_22, %c0_23] : memref<64x1xf32, #tpu.memory_space<vmem>>, vector<64x1xf32>
    tpu.vector_store %arg7[%c0_22, %c0_23], %48 {strides = array<i32>} : memref<64x1xf32, #tpu.memory_space<vmem>>, vector<64x1xf32>,
    return
  }
}

</mosaic_0001>

<bundles_post_ra>
// kernel: rnn_forward.1
= control target key start
LH: loop header
LB: loop body
LE: loop exit
PB: predicated region body
PF: predicated region fallthrough
CT: control target
= control target key end

     0   :  { %vm68_vm0 = vcmask 1043456   ;;  %vm43_vm1 = vcmask 31744   ;;  %v1082_v0 = vmov 0.0|0.0   ;;  %vm1083_vm2 = vmmov 0   ;;  %s1322_s3 = inlined_call_operand.vmem [shape: f32[32,32], index: 3, kind: input, shape index: {}]   ;;  %s1323_s2 = inlined_call_operand.vmem [shape: f32[4,32], index: 2, kind: input, shape index: {}]   ;;  %s1324_s0 = inlined_call_operand.vmem [shape: f32[64,4], index: 0, kind: input, shape index: {}]   ;;  %s1325_s1 = inlined_call_operand.vmem [shape: f32[8,32], index: 1, kind: input, shape index: {}]   ;;  %s1326_s4 = inlined_call_operand.vmem [shape: f32[1,32], index: 4, kind: input, shape index: {}]   ;;  %s1327_s5 = inlined_call_operand.vmem [shape: f32[1,32], index: 5, kind: input, shape index: {}]   ;;  %s1328_s6 = inlined_call_operand.<no memory space> [shape: f32[1,1], index: 6, kind: input, shape index: {}]   ;;  %s1329_s7 = inlined_call_operand.vmem [shape: f32[64,1], index: 7, kind: output, shape index: {}]  }
   0x1   :  { %1015 = vmatprep.subr.bf16.mxu1 %v1082_v0  ;;  %v177_v1 = vld [vmem:[%s1322_s3] sm:$0xff]  ;;  %v178_v2 = vld [vmem:[%s1322_s3 + $0x8] sm:$0xff]  ;;  %v179_v7 = vld [vmem:[%s1322_s3 + $0x10] sm:$0xff]  ;;  %v1084_v8 = vmov 0.0   ;;  %vm182_vm3 = vcmask 261120   ;;  %v1225_v29 = vstv %s1328_s6  ;;  %vm832_vm4 = vcmask 7168  }
   0x2   :  { %v35_v3 = vld [vmem:[%s1323_s2] sm:$0xf]  ;;  %v1135_v4 = vpack.c.bf16 %v178_v2, %v177_v1  ;;  %v28_v6 = vld [vmem:[%s1324_s0 + $0x8] sm:$0xff]  ;;  %935 = vmatprep.mubr.msk.f32.mxu1 %vm1083_vm2, %v1084_v8  ;;  %v180_v9 = vld [vmem:[%s1322_s3 + $0x18] sm:$0xff] }
   0x3   :  { %913 = vmatprep.subr.msk.mxu0 %vm68_vm0, %v35_v3  ;;  %v27_v5 = vld [vmem:[%s1324_s0] sm:$0xff]  ;;  %v1156_v10 = vpack.c.bf16 %v180_v9, %v179_v7  ;;  %v29_v23 = vld [vmem:[%s1324_s0 + $0x10] sm:$0xff]  ;;  %v30_v24 = vld [vmem:[%s1324_s0 + $0x18] sm:$0xff] }
   0x4   :  { %914 = vmatpush3.msk.msra.mxu0 %vm68_vm0, %v35_v3  ;;  %915 = vmatprep.mubr.msk.f32.mxu0 %vm43_vm1, %v27_v5  ;;  %v181_v11 = vld [vmem:[%s1325_s1] sm:$0xff]  ;;  %v32_v26 = vld [vmem:[%s1324_s0 + $0x28] sm:$0xff]  ;;  %v33_v27 = vld [vmem:[%s1324_s0 + $0x30] sm:$0xff] }
   0x5   :  { %1017 = vmatpush3.bf16.msra.mxu1 %v1135_v4  ;;  %916 = vmatmul.mubr.msk.f32.vlgmr.msra.gmra.mrb[0].mxu0 %vm43_vm1, %v28_v6  ;;  %v1179_v13 = vld [vmem:[%s1326_s4] ss:$0 sm:$0xff]  ;;  %v34_v28 = vld [vmem:[%s1324_s0 + $0x38] sm:$0xff] }
   0x6   :  { %1018 = vmatprep.subr.bf16.mxu1 %v1082_v0  ;;  %1027 = vmatprep.subr.bf16.mxu0 %v1082_v0  ;;  %v1185_v19 = vld [vmem:[%s1327_s5] ss:$0 sm:$0xff] }
   0x7   :  { %1029 = vmatpush3.bf16.msra.mxu0 %v1135_v4  ;;  %918 = vmatprep.mubr.msk.f32.mxu0 %vm43_vm1, %v29_v23  ;;  %v31_v25 = vld [vmem:[%s1324_s0 + $0x20] sm:$0xff] }
   0x8   :  { %1030 = vmatprep.subr.bf16.mxu0 %v1082_v0 }
   0x9   :  { %1020 = vmatpush3.bf16.msra.mxu1 %v1156_v10  ;;  %919 = vmatmul.mubr.msk.f32.gmra.mrb[2].mxu0 %vm43_vm1, %v30_v24 }
   0xa   :  { %1021 = vmatprep.subr.bf16.mxu1 %v1082_v0  ;;  %921 = vmatprep.mubr.msk.f32.mxu0 %vm43_vm1, %v31_v25 }
   0xb   :  { %1032 = vmatpush3.bf16.msra.mxu0 %v1156_v10 }
   0xc   :  { %936 = vmatmul.mubr.msk.f32.vlgmr.msra.gmra.mrb[0].mxu1 %vm182_vm3, %v181_v11  ;;  %1039 = vmatprep.subr.bf16.mxu0 %v1082_v0 }
   0xd   :  { %1023 = vmatpush3.bf16.msra.mxu1 %v1135_v4  ;;  %946 = vmatprep.mubr.msk.f32.mxu1 %vm1083_vm2, %v1084_v8 }
   0xe   :  { %1024 = vmatprep.subr.bf16.mxu1 %v1082_v0  ;;  %922 = vmatmul.mubr.msk.f32.gmra.mrb[4].mxu0 %vm43_vm1, %v32_v26 }
   0xf   :  { %924 = vmatprep.mubr.msk.f32.mxu0 %vm43_vm1, %v33_v27 }
  0x11   :  { %1026 = vmatpush3.bf16.msra.mxu1 %v1156_v10 }
  0x12   :  { %1033 = vmatprep.subr.bf16.mxu1 %v1082_v0  ;;  %925 = vmatmul.mubr.msk.f32.gmra.mrb[6].mxu0 %vm43_vm1, %v34_v28 }
  0x13   :  { %957 = vmatprep.mubr.msk.f32.mxu0 %vm1083_vm2, %v1084_v8 }
  0xd8   :  { %v917_v12 = vpop.f32.mrb[0].mxu0 }
  0xd9   :  { %v138_v14 = vpop.f32.mrb[1].mxu0  ;;  %v144_v32 = vadd.f32 %v917_v12, %v1179_v13 }
  0xda   :  { %v139_v15 = vadd.f32 %v1179_v13, %v138_v14 }
  0xdc   :  { %v920_v39 = vpop.f32.mrb[2].mxu0 }
  0xdd   :  { %v148_v40 = vpop.f32.mrb[3].mxu0  ;;  %v154_v56 = vadd.f32 %v920_v39, %v1179_v13 }
  0xde   :  { %v149_v47 = vadd.f32 %v1179_v13, %v148_v40 }
  0xdf   :  { %v252_v16 = vpop.f32.mrb[0].mxu1 }
  0xe0   :  { %v256_v17 = vadd.f32 %v252_v16, %v139_v15  ;;  %v937_v18 = vpop.f32.mrb[1].mxu1 }
  0xe1   :  { %v923_v41 = vpop.f32.mrb[4].mxu0 }
  0xe2   :  { %1066 = vtanh.f32 %v256_v17  ;;  %v158_v42 = vpop.f32.mrb[5].mxu0 }
  0xe3   :  { %v159_v2 = vadd.f32 %v1179_v13, %v158_v42 }
  0xe5   :  { %v1242_v43 = vpop.f32.mrb[6].mxu0 }
  0xe6   :  { %v1244_v44 = vpop.f32.mrb[7].mxu0 }
  0xec   :  { %v1067_v20 = vpop.eup %1066 }
  0xed   :  { %947 = vmatmul.mubr.msk.f32.vlgmr.msra.gmra.mrb[2].mxu1 %vm182_vm3, %v1067_v20  ;;  %v790_v21 = vmul.f32 %v1067_v20, %v1185_v19 }
  0xee   :  { %1035 = vmatpush3.bf16.msra.mxu1 %v1135_v4  ;;  %968 = vmatprep.mubr.msk.f32.mxu1 %vm1083_vm2, %v1084_v8 }
  0xef   :  { %v798_v22 = vsel %vm182_vm3, %v790_v21, 0.0  ;;  %1036 = vmatprep.subr.bf16.mxu1 %v1082_v0  ;;  %v169_v21 = vadd.f32 %v1179_v13, %v1244_v44 }
  0xf0   :  { %799 = vadd.xlane.f32.xlu0 %v798_v22 }
  0xf2   :  { %1038 = vmatpush3.bf16.msra.mxu1 %v1156_v10 }
  0xf3   :  { %1045 = vmatprep.subr.bf16.mxu1 %v1082_v0 }
 0x17d   :  { %v800_v30 = vpop.xlane.xlu0 %799 }
 0x17e   :  { %v824_v31 = vadd.f32 %v1225_v29, %v800_v30 }
 0x180   :  { %833 = vst.msk [vmem:[%s1329_s7] sm:$0xff] %vm832_vm4, %v824_v31  ;;  %v174_v31 = vadd.f32 %v1242_v43, %v1179_v13 }
 0x1c0   :  { %v327_v33 = vpop.f32.mrb[2].mxu1 }
 0x1c1   :  { %v331_v34 = vadd.f32 %v327_v33, %v144_v32  ;;  %v948_v35 = vpop.f32.mrb[3].mxu1 }
 0x1c3   :  { %1068 = vtanh.f32 %v331_v34 }
 0x1cd   :  { %v1069_v36 = vpop.eup %1068 }
 0x1ce   :  { %958 = vmatmul.mubr.msk.f32.vlgmr.msra.gmra.mrb[8].mxu0 %vm182_vm3, %v1069_v36  ;;  %v791_v37 = vmul.f32 %v1069_v36, %v1185_v19 }
 0x1cf   :  { %1041 = vmatpush3.bf16.msra.mxu0 %v1135_v4  ;;  %979 = vmatprep.mubr.msk.f32.mxu0 %vm1083_vm2, %v1084_v8 }
 0x1d0   :  { %v801_v38 = vsel %vm182_vm3, %v791_v37, 0.0  ;;  %1042 = vmatprep.subr.bf16.mxu0 %v1082_v0 }
 0x1d1   :  { %802 = vadd.xlane.f32.xlu0 %v801_v38 }
 0x1d3   :  { %1044 = vmatpush3.bf16.msra.mxu0 %v1156_v10 }
 0x1d4   :  { %1051 = vmatprep.subr.bf16.mxu0 %v1082_v0 }
 0x25e   :  { %v803_v45 = vpop.xlane.xlu0 %802 }
 0x25f   :  { %v825_v46 = vadd.f32 %v1225_v29, %v803_v45 }
 0x261   :  { %834 = vst.msk [vmem:[%s1329_s7 + $0x8] sm:$0xff] %vm832_vm4, %v825_v46 }
 0x2a1   :  { %v402_v48 = vpop.f32.mrb[8].mxu0 }
 0x2a2   :  { %v406_v49 = vadd.f32 %v402_v48, %v149_v47  ;;  %v959_v50 = vpop.f32.mrb[9].mxu0 }
 0x2a4   :  { %1070 = vtanh.f32 %v406_v49 }
 0x2ae   :  { %v1071_v51 = vpop.eup %1070 }
 0x2af   :  { %969 = vmatmul.mubr.msk.f32.vlgmr.msra.gmra.mrb[4].mxu1 %vm182_vm3, %v1071_v51  ;;  %v792_v52 = vmul.f32 %v1071_v51, %v1185_v19 }
 0x2b0   :  { %1047 = vmatpush3.bf16.msra.mxu1 %v1135_v4  ;;  %990 = vmatprep.mubr.msk.f32.mxu1 %vm1083_vm2, %v1084_v8 }
 0x2b1   :  { %v804_v53 = vsel %vm182_vm3, %v792_v52, 0.0  ;;  %1048 = vmatprep.subr.bf16.mxu1 %v1082_v0 }
 0x2b2   :  { %805 = vadd.xlane.f32.xlu1 %v804_v53 }
 0x2b4   :  { %1050 = vmatpush3.bf16.msra.mxu1 %v1156_v10 }
 0x2b5   :  { %1057 = vmatprep.subr.bf16.mxu1 %v1082_v0 }
 0x33f   :  { %v806_v54 = vpop.xlane.xlu1 %805 }
 0x340   :  { %v826_v55 = vadd.f32 %v1225_v29, %v806_v54 }
 0x342   :  { %835 = vst.msk [vmem:[%s1329_s7 + $0x10] sm:$0xff] %vm832_vm4, %v826_v55 }
 0x382   :  { %v477_v57 = vpop.f32.mrb[4].mxu1 }
 0x383   :  { %v481_v58 = vadd.f32 %v477_v57, %v154_v56  ;;  %v970_v59 = vpop.f32.mrb[5].mxu1 }
 0x385   :  { %1072 = vtanh.f32 %v481_v58 }
 0x38f   :  { %v1073_v60 = vpop.eup %1072 }
 0x390   :  { %980 = vmatmul.mubr.msk.f32.vlgmr.msra.gmra.mrb[10].mxu0 %vm182_vm3, %v1073_v60  ;;  %v793_v61 = vmul.f32 %v1073_v60, %v1185_v19 }
 0x391   :  { %1053 = vmatpush3.bf16.msra.mxu0 %v1135_v4  ;;  %1001 = vmatprep.mubr.msk.f32.mxu0 %vm1083_vm2, %v1084_v8 }
 0x392   :  { %v807_v62 = vsel %vm182_vm3, %v793_v61, 0.0  ;;  %1054 = vmatprep.subr.bf16.mxu0 %v1082_v0 }
 0x393   :  { %808 = vadd.xlane.f32.xlu1 %v807_v62 }
 0x395   :  { %1056 = vmatpush3.bf16.msra.mxu0 %v1156_v10 }
 0x420   :  { %v809_v63 = vpop.xlane.xlu1 %808 }
 0x421   :  { %v827_v1 = vadd.f32 %v1225_v29, %v809_v63 }
 0x423   :  { %836 = vst.msk [vmem:[%s1329_s7 + $0x18] sm:$0xff] %vm832_vm4, %v827_v1 }
 0x463   :  { %v552_v3 = vpop.f32.mrb[10].mxu0 }
 0x464   :  { %v556_v5 = vadd.f32 %v552_v3, %v159_v2  ;;  %v981_v6 = vpop.f32.mrb[11].mxu0 }
 0x466   :  { %1074 = vtanh.f32 %v556_v5 }
 0x470   :  { %v1075_v7 = vpop.eup %1074 }
 0x471   :  { %991 = vmatmul.mubr.msk.f32.vlgmr.msra.gmra.mrb[6].mxu1 %vm182_vm3, %v1075_v7  ;;  %v794_v9 = vmul.f32 %v1075_v7, %v1185_v19 }
 0x472   :  { %1059 = vmatpush3.bf16.msra.mxu1 %v1135_v4  ;;  %1012 = vmatprep.mubr.msk.f32.mxu1 %vm1083_vm2, %v1084_v8  ;;  %v164_v4 = vadd.f32 %v923_v41, %v1179_v13 }
 0x473   :  { %v810_v11 = vsel %vm182_vm3, %v794_v9, 0.0  ;;  %1060 = vmatprep.subr.bf16.mxu1 %v1082_v0 }
 0x474   :  { %811 = vadd.xlane.f32.xlu0 %v810_v11 }
 0x476   :  { %1062 = vmatpush3.bf16.msra.mxu1 %v1156_v10 }
 0x501   :  { %v812_v12 = vpop.xlane.xlu0 %811 }
 0x502   :  { %v828_v14 = vadd.f32 %v1225_v29, %v812_v12 }
 0x504   :  { %837 = vst.msk [vmem:[%s1329_s7 + $0x20] sm:$0xff] %vm832_vm4, %v828_v14 }
 0x544   :  { %v627_v15 = vpop.f32.mrb[6].mxu1 }
 0x545   :  { %v631_v16 = vadd.f32 %v627_v15, %v164_v4  ;;  %v992_v8 = vpop.f32.mrb[7].mxu1 }
 0x547   :  { %1076 = vtanh.f32 %v631_v16 }
 0x551   :  { %v1077_v17 = vpop.eup %1076 }
 0x552   :  { %1002 = vmatmul.mubr.msk.f32.vlgmr.msra.gmra.mrb[12].mxu0 %vm182_vm3, %v1077_v17  ;;  %v795_v0 = vmul.f32 %v1077_v17, %v1185_v19 }
 0x554   :  { %v813_v10 = vsel %vm182_vm3, %v795_v0, 0.0 }
 0x555   :  { %814 = vadd.xlane.f32.xlu1 %v813_v10 }
 0x5e2   :  { %v815_v18 = vpop.xlane.xlu1 %814 }
 0x5e3   :  { %v829_v20 = vadd.f32 %v1225_v29, %v815_v18 }
 0x5e5   :  { %838 = vst.msk [vmem:[%s1329_s7 + $0x28] sm:$0xff] %vm832_vm4, %v829_v20 }
 0x625   :  { %v702_v22 = vpop.f32.mrb[12].mxu0 }
 0x626   :  { %v706_v23 = vadd.f32 %v702_v22, %v169_v21  ;;  %v1003_v24 = vpop.f32.mrb[13].mxu0 }
 0x628   :  { %1078 = vtanh.f32 %v706_v23 }
 0x632   :  { %v1079_v25 = vpop.eup %1078 }
 0x633   :  { %1013 = vmatmul.mubr.msk.f32.vlgmr.msra.gmra.mrb[8].mxu1 %vm182_vm3, %v1079_v25  ;;  %v796_v26 = vmul.f32 %v1079_v25, %v1185_v19 }
 0x635   :  { %v816_v27 = vsel %vm182_vm3, %v796_v26, 0.0 }
 0x636   :  { %817 = vadd.xlane.f32.xlu0 %v816_v27 }
 0x6c3   :  { %v818_v28 = vpop.xlane.xlu0 %817 }
 0x6c4   :  { %v830_v30 = vadd.f32 %v1225_v29, %v818_v28 }
 0x6c6   :  { %839 = vst.msk [vmem:[%s1329_s7 + $0x30] sm:$0xff] %vm832_vm4, %v830_v30 }
 0x706   :  { %v777_v32 = vpop.f32.mrb[8].mxu1 }
 0x707   :  { %v781_v33 = vadd.f32 %v777_v32, %v174_v31  ;;  %v1014_v34 = vpop.f32.mrb[9].mxu1 }
 0x709   :  { %1080 = vtanh.f32 %v781_v33 }
 0x713   :  { %v1081_v35 = vpop.eup %1080 }
 0x714   :  { %v797_v36 = vmul.f32 %v1081_v35, %v1185_v19 }
 0x716   :  { %v819_v37 = vsel %vm182_vm3, %v797_v36, 0.0 }
 0x717   :  { %820 = vadd.xlane.f32.xlu1 %v819_v37 }
 0x7a4   :  { %v821_v38 = vpop.xlane.xlu1 %820 }
 0x7a5   :  { %v831_v39 = vadd.f32 %v1225_v29, %v821_v38 }
 0x7a7   :  { %840 = vst.msk [vmem:[%s1329_s7 + $0x38] sm:$0xff] %vm832_vm4, %v831_v39 }

</bundles_post_ra>
